<compile_context>
chip_gen: v6e
topology: v6e:2x2x1
jax: 0.10.0
libtpu: 0.0.40
codegen_flags: <defaults>
</compile_context>

<pallas_src>
import functools

import jax
import jax.numpy as jnp
from jax.experimental import pallas as pl
from jax.experimental.pallas import tpu as pltpu

_EPS = 1e-5
_MAX_TILE_ROWS = 8192


def _vmem_budget_and_limit():
    """(block byte budget, scoped vmem limit) per TPU generation."""
    try:
        kind = jax.devices()[0].device_kind.lower()
    except Exception:  # interpret mode / unknown backend
        kind = ""
    if ("v5" in kind) or ("v6" in kind):
        # 128 MiB physical VMEM: bigger blocks shave per-step overhead.
        return 48 * 1024 * 1024, 96 * 1024 * 1024
    # v7x (64 MiB physical per TC) or unknown: stay conservative. Blocks of
    # a few MiB are already past the ~85%-of-HBM-roofline knee.
    return 24 * 1024 * 1024, 48 * 1024 * 1024


def _sublane(itemsize):
    return max(8, 32 // max(1, itemsize))  # 8 f32, 16 bf16, 32 int8/fp8


def _pick_tile_rows(rows, width, itemsize, budget_bytes):
    """VMEM-budget-driven tile size, sublane-aligned, >=2 grid steps."""
    sub = _sublane(itemsize)
    # Per-row VMEM cost: in + out blocks double-buffered (2x each) plus ~2
    # full-tile f32 temporaries inside the kernel body.
    per_row = width * (4 * itemsize + 8)
    t = budget_bytes // max(1, per_row)
    t = min(max(t, sub), _MAX_TILE_ROWS)
    # Guarantee >= 2 grid steps when there is enough work, so the "parallel"
    # axis can be sharded across both TensorCores on v7x.
    if rows >= 2 * sub:
        half = ((rows + 1) // 2 + sub - 1) // sub * sub
        t = min(t, half)
    t = max(sub, (t // sub) * sub)
    cap = max(sub, (rows + sub - 1) // sub * sub)
    return min(t, cap)


def _make_ln_kernel(inv_n, has_bias, use_seg, one_pass):
    """Kernel body specialized on bias presence, lane folding and stats mode."""

    def kernel(*refs):
        refs = list(refs)
        x_ref = refs.pop(0)
        w_ref = refs.pop(0)
        seg_ref = refs.pop(0) if use_seg else None
        b_ref = refs.pop(0) if has_bias else None
        o_ref = refs.pop(0)

        x = x_ref[...].astype(jnp.float32)

        if use_seg:
            # Folded block: each row holds `fold` independent length-ndim
            # segments. One matmul with a block-diagonal ones matrix yields
            # the per-segment sum broadcast to every lane of its segment.
            seg = seg_ref[...]

            def seg_sum(v):
                return jnp.dot(v, seg, preferred_element_type=jnp.float32)
        else:

            def seg_sum(v):
                return jnp.sum(v, axis=-1, keepdims=True)  # XLU cross-lane sum

        mean = seg_sum(x) * inv_n
        if one_pass:
            # Single sweep over x: var = E[x^2] - mean^2 (no xc temporary).
            var = jnp.maximum(seg_sum(x * x) * inv_n - mean * mean, 0.0)
        else:
            xc = x - mean
            var = seg_sum(xc * xc) * inv_n
        y = (x - mean) * jax.lax.rsqrt(var + _EPS)  # rsqrt -> EUP slot
        y = y * w_ref[...].astype(jnp.float32)
        if has_bias:
            y = y + b_ref[...].astype(jnp.float32)
        o_ref[...] = y.astype(o_ref.dtype)

    return kernel


@functools.partial(jax.jit, static_argnames=("tile_rows", "one_pass_stats"))
def layer_norm(x, weight, bias=None, *, tile_rows=None, one_pass_stats=True):
    """LayerNorm over the last dim of x. weight: (ndim,), bias: (ndim,) or None."""
    ndim = x.shape[-1]
    assert weight.shape == (ndim,)
    has_bias = bias is not None

    orig_shape = x.shape
    rows = 1
    for d in orig_shape[:-1]:
        rows *= d

    # Lane folding for small hidden sizes: pack fold = 128//ndim rows per
    # folded row so output stores are full-lane (lane-dense).
    fold = 1
    if ndim % 128 != 0 and 128 % ndim == 0:
        f = 128 // ndim
        if f > 1 and rows % f == 0:
            fold = f
    # TODO(synk): ndim that neither divides nor is a multiple of 128 (e.g. 96)
    # still takes the masked-store fallback below.

    width = fold * ndim
    rows_f = rows // fold
    x2 = x.reshape(rows_f, width)
    w2 = (jnp.tile(weight, fold) if fold > 1 else weight).reshape(1, width)

    itemsize = jnp.dtype(x.dtype).itemsize
    budget, vmem_limit = _vmem_budget_and_limit()
    if tile_rows is None:
        tr = _pick_tile_rows(rows_f, width, itemsize, budget)
    else:
        sub = _sublane(itemsize)
        tr = max(sub, (int(tile_rows) + sub - 1) // sub * sub)

    in_specs = [
        pl.BlockSpec((tr, width), lambda i: (i, 0)),
        pl.BlockSpec((1, width), lambda i: (0, 0)),
    ]
    args = [x2, w2]
    if fold > 1:
        lane_id = jnp.arange(width) // ndim
        seg = (lane_id[:, None] == lane_id[None, :]).astype(jnp.float32)
        in_specs.append(pl.BlockSpec((width, width), lambda i: (0, 0)))
        args.append(seg)
    if has_bias:
        b2 = (jnp.tile(bias, fold) if fold > 1 else bias).reshape(1, width)
        in_specs.append(pl.BlockSpec((1, width), lambda i: (0, 0)))
        args.append(b2)

    out = pl.pallas_call(
        _make_ln_kernel(1.0 / float(ndim), has_bias, fold > 1, one_pass_stats),
        out_shape=jax.ShapeDtypeStruct((rows_f, width), x.dtype),
        grid_spec=pltpu.PrefetchScalarGridSpec(
            num_scalar_prefetch=0,
            grid=(pl.cdiv(rows_f, tr),),
            in_specs=in_specs,
            out_specs=pl.BlockSpec((tr, width), lambda i: (i, 0)),
        ),
        compiler_params=pltpu.CompilerParams(
            dimension_semantics=("parallel",),
            vmem_limit_bytes=vmem_limit,
        ),
    )(*args)

    return out.reshape(orig_shape)


def _reference_layer_norm(x, weight, bias):
    xf = x.astype(jnp.float32)
    mean = jnp.mean(xf, axis=-1, keepdims=True)
    var = jnp.mean((xf - mean) ** 2, axis=-1, keepdims=True)
    y = (xf - mean) / jnp.sqrt(var + _EPS)
    y = y * weight.astype(jnp.float32)
    if bias is not None:
        y = y + bias.astype(jnp.float32)
    return y.astype(x.dtype)


if __name__ == "__main__":
    key = jax.random.PRNGKey(0)
    k_x, k_w, k_b, k_x2, k_x3, k_w3, k_b3 = jax.random.split(key, 7)

    batch, seq, hidden = 2, 8, 32
    x = jax.random.normal(k_x, (batch, seq, hidden), dtype=jnp.float32)
    weight = 1.0 + 0.1 * jax.random.normal(k_w, (hidden,), dtype=jnp.float32)
    bias = 0.1 * jax.random.normal(k_b, (hidden,), dtype=jnp.float32)

    # bias=True, lane-folded path (hidden=32 -> fold=4, lane-dense stores).
    out = jax.block_until_ready(layer_norm(x, weight, bias))
    ref = _reference_layer_norm(x, weight, bias)
    assert jnp.allclose(out, ref, atol=1e-5, rtol=1e-5), "bias=True mismatch"

    # bias=False path (module stores bias=None), folded.
    out_nb = jax.block_until_ready(layer_norm(x, weight, None))
    ref_nb = _reference_layer_norm(x, weight, None)
    assert jnp.allclose(out_nb, ref_nb, atol=1e-5, rtol=1e-5), "bias=False mismatch"

    # Ragged rows (rows % fold != 0): exercises the unfolded fallback with
    # masked tail writes — no wrapper-side padding.
    x_r = jax.random.normal(k_x2, (3, 5, hidden), dtype=jnp.float32)
    out_r = jax.block_until_ready(layer_norm(x_r, weight, bias))
    ref_r = _reference_layer_norm(x_r, weight, bias)
    assert jnp.allclose(out_r, ref_r, atol=1e-5, rtol=1e-5), "ragged rows mismatch"

    # Lane-dense fast path (hidden multiple of 128), two-pass statistics.
    hidden2 = 256
    x3 = jax.random.normal(k_x3, (batch, seq, hidden2), dtype=jnp.float32)
    w3 = 1.0 + 0.1 * jax.random.normal(k_w3, (hidden2,), dtype=jnp.float32)
    b3 = 0.1 * jax.random.normal(k_b3, (hidden2,), dtype=jnp.float32)
    out3 = jax.block_until_ready(layer_norm(x3, w3, b3, one_pass_stats=False))
    ref3 = _reference_layer_norm(x3, w3, b3)
    assert jnp.allclose(out3, ref3, atol=1e-5, rtol=1e-5), "hidden=256 mismatch"

    print("KERNEL_OK")
</pallas_src>

<mosaic_0001>
module attributes {stable_mosaic.version = 11 : i64} {
  func.func @kernel(%arg0: i32, %arg1: memref<8x128xf32, #tpu.memory_space<vmem>>, %arg2: memref<1x128xf32, #tpu.memory_space<vmem>>, %arg3: memref<128x128xf32, #tpu.memory_space<vmem>>, %arg4: memref<1x128xf32, #tpu.memory_space<vmem>>, %arg5: memref<8x128xf32, #tpu.memory_space<vmem>>) attributes {dimension_semantics = [#tpu.dimension_semantics<parallel>], iteration_bounds = array<i64: 1>, scalar_prefetch = 0 : i64, scratch_operands = 0 : i64, tpu.core_type = #tpu.core_type<tc>, window_params = [{transform_indices = @transform_0, window_bounds = array<i64: 8, 128>}, {pipeline_mode = #tpu.pipeline_mode<synchronous>, transform_indices = @transform_1, window_bounds = array<i64: 1, 128>}, {pipeline_mode = #tpu.pipeline_mode<synchronous>, transform_indices = @transform_2, window_bounds = array<i64: 128, 128>}, {pipeline_mode = #tpu.pipeline_mode<synchronous>, transform_indices = @transform_3, window_bounds = array<i64: 1, 128>}, {transform_indices = @transform_4, window_bounds = array<i64: 8, 128>}]} {
    %c0 = arith.constant 0 : index
    %c0_0 = arith.constant 0 : index
    %0 = vector.load %arg1[%c0, %c0_0] : memref<8x128xf32, #tpu.memory_space<vmem>>, vector<8x128xf32>
    %c0_1 = arith.constant 0 : index
    %c0_2 = arith.constant 0 : index
    %1 = vector.load %arg3[%c0_1, %c0_2] : memref<128x128xf32, #tpu.memory_space<vmem>>, vector<128x128xf32>
    %cst = arith.constant dense<0.000000e+00> : vector<8x128xf32>
    %2 = tpu.matmul %0, %1, %cst {dimension_numbers = #tpu.dot_dimension_numbers<[1], [0], [0], [1], [0, 0, 1, 1], [], []>} : vector<8x128xf32>, vector<128x128xf32>, vector<8x128xf32> -> vector<8x128xf32>
    %cst_3 = arith.constant 3.125000e-02 : f32
    %3 = vector.broadcast %cst_3 : f32 to vector<8x128xf32>
    %4 = arith.mulf %2, %3 : vector<8x128xf32>
    %5 = arith.mulf %0, %0 : vector<8x128xf32>
    %cst_4 = arith.constant dense<0.000000e+00> : vector<8x128xf32>
    %6 = tpu.matmul %5, %1, %cst_4 {dimension_numbers = #tpu.dot_dimension_numbers<[1], [0], [0], [1], [0, 0, 1, 1], [], []>} : vector<8x128xf32>, vector<128x128xf32>, vector<8x128xf32> -> vector<8x128xf32>
    %cst_5 = arith.constant 3.125000e-02 : f32
    %7 = vector.broadcast %cst_5 : f32 to vector<8x128xf32>
    %8 = arith.mulf %6, %7 : vector<8x128xf32>
    %9 = arith.mulf %4, %4 : vector<8x128xf32>
    %10 = arith.subf %8, %9 : vector<8x128xf32>
    %cst_6 = arith.constant 0.000000e+00 : f32
    %11 = vector.broadcast %cst_6 : f32 to vector<8x128xf32>
    %12 = arith.maximumf %10, %11 : vector<8x128xf32>
    %13 = arith.subf %0, %4 : vector<8x128xf32>
    %cst_7 = arith.constant 9.99999974E-6 : f32
    %14 = vector.broadcast %cst_7 : f32 to vector<8x128xf32>
    %15 = arith.addf %12, %14 : vector<8x128xf32>
    %16 = math.rsqrt %15 : vector<8x128xf32>
    %17 = arith.mulf %13, %16 : vector<8x128xf32>
    %c0_8 = arith.constant 0 : index
    %c0_9 = arith.constant 0 : index
    %18 = vector.load %arg2[%c0_8, %c0_9] : memref<1x128xf32, #tpu.memory_space<vmem>>, vector<1x128xf32>
    %19 = vector.broadcast %18 : vector<1x128xf32> to vector<8x128xf32>
    %20 = arith.mulf %17, %19 : vector<8x128xf32>
    %c0_10 = arith.constant 0 : index
    %c0_11 = arith.constant 0 : index
    %21 = vector.load %arg4[%c0_10, %c0_11] : memref<1x128xf32, #tpu.memory_space<vmem>>, vector<1x128xf32>
    %22 = vector.broadcast %21 : vector<1x128xf32> to vector<8x128xf32>
    %23 = arith.addf %20, %22 : vector<8x128xf32>
    %c0_12 = arith.constant 0 : index
    %c0_13 = arith.constant 0 : index
    %24 = vector.load %arg5[%c0_12, %c0_13] : memref<8x128xf32, #tpu.memory_space<vmem>>, vector<8x128xf32>
    tpu.vector_store %arg5[%c0_12, %c0_13], %23 {strides = array<i32>} : memref<8x128xf32, #tpu.memory_space<vmem>>, vector<8x128xf32>,
    return
  }
  func.func @transform_0(%arg0: i32) -> (i32, i32) {
    %c0_i32 = arith.constant 0 : i32
    %c0_i32_0 = arith.constant 0 : i32
    return %arg0, %c0_i32 : i32, i32
  }
  func.func @transform_1(%arg0: i32) -> (i32, i32) {
    %c0_i32 = arith.constant 0 : i32
    %c0_i32_0 = arith.constant 0 : i32
    %c0_i32_1 = arith.constant 0 : i32
    return %c0_i32, %c0_i32_0 : i32, i32
  }
  func.func @transform_2(%arg0: i32) -> (i32, i32) {
    %c0_i32 = arith.constant 0 : i32
    %c0_i32_0 = arith.constant 0 : i32
    %c0_i32_1 = arith.constant 0 : i32
    return %c0_i32, %c0_i32_0 : i32, i32
  }
  func.func @transform_3(%arg0: i32) -> (i32, i32) {
    %c0_i32 = arith.constant 0 : i32
    %c0_i32_0 = arith.constant 0 : i32
    %c0_i32_1 = arith.constant 0 : i32
    return %c0_i32, %c0_i32_0 : i32, i32
  }
  func.func @transform_4(%arg0: i32) -> (i32, i32) {
    %c0_i32 = arith.constant 0 : i32
    %c0_i32_0 = arith.constant 0 : i32
    return %arg0, %c0_i32 : i32, i32
  }
}

</mosaic_0001>

<bundles_post_ra>
// kernel: tile.14
= control target key start
LH: loop header
LB: loop body
LE: loop exit
PB: predicated region body
PF: predicated region fallthrough
CT: control target
= control target key end

     0   :  { %vm8_vm0 = vcmask 261120   ;;  %s40_s8 = smov 32   ;;  %s41_s9 = smov 64   ;;  %vm14_vm1 = vcmask 1048320   ;;  %vm20_vm2 = vcmask 785920   ;;  %vm26_vm3 = vcmask 523520   ;;  %s58_s0 = inlined_call_operand.vmem [shape: f32[4,32], index: 0, kind: input, shape index: {}]   ;;  %s59_s1 = inlined_call_operand.vmem [shape: f32[1,128], index: 1, kind: output, shape index: {}]  }
   0x1   :  { %v5_v0 = vld [vmem:[%s58_s0] sm:$0xf]  ;;  %s39_s0 = smov 96  }
   0x2   :  { %6 = vst [vmem:[#allocation1] sm:$0xf] %v5_v0 }
   0x9   :  { %v11_v1 = vld [vmem:[#allocation1 + $0x3] sm:$0x1]   ;;  %v23_v2 = vld [vmem:[#allocation1 + $0x1] sm:$0x1]   ;;  %v7_v3 = vld [vmem:[#allocation1] sm:$0x1]  }
   0xa   :  { %12 = vrot.lane.b32.xlu0 %v11_v1, %s39_s0  ;;  %24 = vrot.lane.b32.xlu1 %v23_v2, %s40_s8  ;;  %v17_v4 = vld [vmem:[#allocation1 + $0x2] sm:$0x1]   ;;  %9 = vst.msk [vmem:[#allocation0] sm:$0x1] %vm8_vm0, %v7_v3  }
   0xe   :  { %18 = vrot.lane.b32.xlu0 %v17_v4, %s41_s9 }
  0x7c   :  { %v13_v5 = vpop.permute.xlu0 %12   ;;  %v25_v6 = vpop.permute.xlu1 %24  }
  0x7d   :  { %15 = vst.msk [vmem:[#allocation0] sm:$0x1] %vm14_vm1, %v13_v5  }
  0x80   :  { %v19_v7 = vpop.permute.xlu0 %18  }
  0x81   :  { %21 = vst.msk [vmem:[#allocation0] sm:$0x1] %vm20_vm2, %v19_v7  }
  0x82   :  { %27 = vst.msk [vmem:[#allocation0] sm:$0x1] %vm26_vm3, %v25_v6  }
  0x89   :  { %v32_v8 = vld [vmem:[#allocation0] sm:$0x1] }
  0x8a   :  { %35 = vst [vmem:[%s59_s1] sm:$0x1] %v32_v8 }

// kernel: tile.13
= control target key start
LH: loop header
LB: loop body
LE: loop exit
PB: predicated region body
PF: predicated region fallthrough
CT: control target
= control target key end

     0   :  { %s22_s0 = inlined_call_operand.vmem [shape: f32[32], index: 0, kind: input, shape index: {}]   ;;  %s23_s1 = inlined_call_operand.vmem [shape: f32[4,32], index: 1, kind: output, shape index: {}]  }
   0x1   :  { %v4_v0 = vld [vmem:[%s22_s0] ss:$0 sm:$0xff] }
   0x2   :  { %5 = vst [vmem:[%s23_s1] sm:$0xf] %v4_v0 }

// kernel: layer_norm.1
= control target key start
LH: loop header
LB: loop body
LE: loop exit
PB: predicated region body
PF: predicated region fallthrough
CT: control target
= control target key end

     0   :  { %v352_v1 = vmov 0.0   ;;  %vm353_vm0 = vmmov 0   ;;  %s473_s0 = inlined_call_operand.vmem [shape: f32[4,128], index: 0, kind: input, shape index: {}]   ;;  %s474_s1 = inlined_call_operand.vmem [shape: f32[1,128], index: 1, kind: input, shape index: {}]   ;;  %s475_s2 = inlined_call_operand.vmem [shape: f32[128,128], index: 2, kind: input, shape index: {}]   ;;  %s476_s3 = inlined_call_operand.vmem [shape: f32[1,128], index: 3, kind: input, shape index: {}]   ;;  %s477_s4 = inlined_call_operand.vmem [shape: f32[4,128], index: 4, kind: output, shape index: {}]  }
   0x1   :  { %v33_v0 = vld [vmem:[%s475_s2 + $0x78] sm:$0xff]  ;;  %278 = vmatprep.subr.mxu0 %v352_v1  ;;  %313 = vmatprep.subr.mxu1 %v352_v1  ;;  %v32_v2 = vld [vmem:[%s475_s2 + $0x70] sm:$0xff]  ;;  %v31_v3 = vld [vmem:[%s475_s2 + $0x68] sm:$0xff] }
   0x2   :  { %279 = vmatpush3.msra.mxu0 %v33_v0  ;;  %314 = vmatpush3.msra.mxu1 %v33_v0  ;;  %v30_v4 = vld [vmem:[%s475_s2 + $0x60] sm:$0xff]  ;;  %v29_v5 = vld [vmem:[%s475_s2 + $0x58] sm:$0xff]  ;;  %v28_v6 = vld [vmem:[%s475_s2 + $0x50] sm:$0xff] }
   0x3   :  { %280 = vmatprep.subr.mxu0 %v352_v1  ;;  %315 = vmatprep.subr.mxu1 %v352_v1  ;;  %v27_v7 = vld [vmem:[%s475_s2 + $0x48] sm:$0xff]  ;;  %v26_v8 = vld [vmem:[%s475_s2 + $0x40] sm:$0xff]  ;;  %v25_v9 = vld [vmem:[%s475_s2 + $0x38] sm:$0xff] }
   0x4   :  { %281 = vmatpush3.msra.mxu0 %v32_v2  ;;  %316 = vmatpush3.msra.mxu1 %v32_v2  ;;  %v24_v10 = vld [vmem:[%s475_s2 + $0x30] sm:$0xff]  ;;  %v23_v11 = vld [vmem:[%s475_s2 + $0x28] sm:$0xff]  ;;  %v22_v12 = vld [vmem:[%s475_s2 + $0x20] sm:$0xff] }
   0x5   :  { %282 = vmatprep.subr.mxu0 %v352_v1  ;;  %317 = vmatprep.subr.mxu1 %v352_v1  ;;  %v21_v13 = vld [vmem:[%s475_s2 + $0x18] sm:$0xff]  ;;  %v20_v14 = vld [vmem:[%s475_s2 + $0x10] sm:$0xff]  ;;  %v19_v15 = vld [vmem:[%s475_s2 + $0x8] sm:$0xff] }
   0x6   :  { %283 = vmatpush3.msra.mxu0 %v31_v3  ;;  %318 = vmatpush3.msra.mxu1 %v31_v3  ;;  %v17_v16 = vld [vmem:[%s473_s0] sm:$0xff] }
   0x7   :  { %284 = vmatprep.subr.mxu0 %v352_v1  ;;  %319 = vmatprep.subr.mxu1 %v352_v1  ;;  %v18_v17 = vld [vmem:[%s475_s2] sm:$0xff]  ;;  %v105_v18 = vmul.f32 %v17_v16, %v17_v16 }
   0x8   :  { %285 = vmatpush3.msra.mxu0 %v30_v4  ;;  %320 = vmatpush3.msra.mxu1 %v30_v4  ;;  %v242_v31 = vld [vmem:[%s474_s1] ss:$0 sm:$0xff] }
   0x9   :  { %286 = vmatprep.subr.mxu0 %v352_v1  ;;  %321 = vmatprep.subr.mxu1 %v352_v1  ;;  %v243_v33 = vld [vmem:[%s476_s3] ss:$0 sm:$0xff] }
   0xa   :  { %287 = vmatpush3.msra.mxu0 %v29_v5  ;;  %322 = vmatpush3.msra.mxu1 %v29_v5 }
   0xb   :  { %288 = vmatprep.subr.mxu0 %v352_v1  ;;  %323 = vmatprep.subr.mxu1 %v352_v1 }
   0xc   :  { %289 = vmatpush3.msra.mxu0 %v28_v6  ;;  %324 = vmatpush3.msra.mxu1 %v28_v6 }
   0xd   :  { %290 = vmatprep.subr.mxu0 %v352_v1  ;;  %325 = vmatprep.subr.mxu1 %v352_v1 }
   0xe   :  { %291 = vmatpush3.msra.mxu0 %v27_v7  ;;  %326 = vmatpush3.msra.mxu1 %v27_v7 }
   0xf   :  { %292 = vmatprep.subr.mxu0 %v352_v1  ;;  %327 = vmatprep.subr.mxu1 %v352_v1 }
  0x10   :  { %293 = vmatpush3.msra.mxu0 %v26_v8  ;;  %328 = vmatpush3.msra.mxu1 %v26_v8 }
  0x11   :  { %294 = vmatprep.subr.mxu0 %v352_v1  ;;  %329 = vmatprep.subr.mxu1 %v352_v1 }
  0x12   :  { %295 = vmatpush3.msra.mxu0 %v25_v9  ;;  %330 = vmatpush3.msra.mxu1 %v25_v9 }
  0x13   :  { %296 = vmatprep.subr.mxu0 %v352_v1  ;;  %331 = vmatprep.subr.mxu1 %v352_v1 }
  0x14   :  { %297 = vmatpush3.msra.mxu0 %v24_v10  ;;  %332 = vmatpush3.msra.mxu1 %v24_v10 }
  0x15   :  { %298 = vmatprep.subr.mxu0 %v352_v1  ;;  %333 = vmatprep.subr.mxu1 %v352_v1 }
  0x16   :  { %299 = vmatpush3.msra.mxu0 %v23_v11  ;;  %334 = vmatpush3.msra.mxu1 %v23_v11 }
  0x17   :  { %300 = vmatprep.subr.mxu0 %v352_v1  ;;  %335 = vmatprep.subr.mxu1 %v352_v1 }
  0x18   :  { %301 = vmatpush3.msra.mxu0 %v22_v12  ;;  %336 = vmatpush3.msra.mxu1 %v22_v12 }
  0x19   :  { %302 = vmatprep.subr.mxu0 %v352_v1  ;;  %337 = vmatprep.subr.mxu1 %v352_v1 }
  0x1a   :  { %303 = vmatpush3.msra.mxu0 %v21_v13  ;;  %338 = vmatpush3.msra.mxu1 %v21_v13 }
  0x1b   :  { %304 = vmatprep.subr.mxu0 %v352_v1  ;;  %339 = vmatprep.subr.mxu1 %v352_v1 }
  0x1c   :  { %305 = vmatpush3.msra.mxu0 %v20_v14  ;;  %340 = vmatpush3.msra.mxu1 %v20_v14 }
  0x1d   :  { %306 = vmatprep.subr.mxu0 %v352_v1  ;;  %341 = vmatprep.subr.mxu1 %v352_v1 }
  0x1e   :  { %307 = vmatpush3.msra.mxu0 %v19_v15  ;;  %342 = vmatpush3.msra.mxu1 %v19_v15 }
  0x1f   :  { %308 = vmatprep.subr.mxu0 %v352_v1  ;;  %343 = vmatprep.subr.mxu1 %v352_v1 }
  0x20   :  { %309 = vmatpush3.msra.mxu0 %v18_v17  ;;  %310 = vmatprep.mubr.msk.f32.mxu0 %vm353_vm0, %v352_v1 }
  0x21   :  { %344 = vmatpush3.msra.mxu1 %v18_v17  ;;  %345 = vmatprep.mubr.msk.f32.mxu1 %vm353_vm0, %v352_v1 }
  0x22   :  { %311 = vmatmul.mubr.f32.vlgmr.msra.gmra.mxu0 %v17_v16  ;;  %346 = vmatmul.mubr.f32.vlgmr.msra.gmra.mxu1 %v105_v18 }
  0xe2   :  { %v100_v19 = vpop.f32.mrf.mxu0  ;;  %v172_v20 = vpop.f32.mrf.mxu1 }
  0xe3   :  { %v104_v21 = vmul.f32 0.03125, %v100_v19  ;;  %v176_v22 = vmul.f32 0.03125, %v172_v20 }
  0xe4   :  { %v312_v23 = vpop.f32.mrf.mxu0  ;;  %v347_v24 = vpop.f32.mrf.mxu1 }
  0xe5   :  { %v177_v25 = vmul.f32 %v104_v21, %v104_v21  ;;  %v180_v29 = vsub.f32 %v17_v16, %v104_v21 }
  0xe7   :  { %v178_v26 = vsub.f32 %v176_v22, %v177_v25 }
  0xe9   :  { %v179_v27 = vmax.f32 %v178_v26, 0.0 }
  0xeb   :  { %v181_v28 = vadd.f32 1e-05, %v179_v27 }
  0xed   :  { %350 = vrsqrt.f32 %v181_v28 }
  0xfa   :  { %v351_v30 = vpop.eup %350 }
  0xfb   :  { %v183_v32 = vmul.f32 %v351_v30, %v180_v29 }
  0xfd   :  { %v191_v34 = vmul.f32 %v242_v31, %v183_v32 }
  0xff   :  { %v199_v35 = vadd.f32 %v243_v33, %v191_v34 }
 0x101   :  { %200 = vst [vmem:[#allocation2] sm:$0xff] %v199_v35 }
 0x108   :  { %v219_v36 = vld [vmem:[#allocation2] sm:$0xf] }
 0x109   :  { %220 = vst [vmem:[%s477_s4] sm:$0xf] %v219_v36 }

</bundles_post_ra>
